<compile_context>
chip_gen: v6e
topology: v6e:2x2x1
jax: 0.10.0
libtpu: 0.0.40
codegen_flags: <defaults>
</compile_context>

<pallas_src>
import math
import numpy as np

import jax
import jax.numpy as jnp
from jax.experimental import pallas as pl
from jax.experimental.pallas import tpu as pltpu


def _round_up(v: int, m: int) -> int:
    return ((v + m - 1) // m) * m


def _make_kernel(num_layers: int, num_offsets: int, pooling: str,
                 tm: int, h0_pad: int, use_scratch: bool):
    """Per-row-tile kernel: one wide layer-0 matmul, offsets folded into rows."""
    O = num_offsets

    def kernel(*refs):
        # refs = [x, w0cat, b0cat, w1, b1, ..., out_ref, (act_scratch)]
        x_ref = refs[0]
        wb = refs[1:1 + 2 * num_layers]
        out_ref = refs[1 + 2 * num_layers]
        act_ref = refs[2 + 2 * num_layers] if use_scratch else None

        x = x_ref[...].astype(jnp.bfloat16)                           # (tm, Fin)

        # ---- layer 0: ONE wide-N matmul covering all offsets ----------------
        h0 = jnp.dot(x, wb[0][...], preferred_element_type=jnp.float32)
        h0 = jnp.maximum(h0 + wb[1][...], 0.0)                        # (tm, O*H0p) f32

        if num_layers == 1:
            # Pool directly over the 128-aligned column blocks.
            pooled = h0[:, 0:h0_pad]
            for o in range(1, O):
                blk = h0[:, o * h0_pad:(o + 1) * h0_pad]
                pooled = (pooled + blk) if pooling == "mean" else jnp.maximum(pooled, blk)
            if pooling == "mean":
                pooled = pooled * (1.0 / O)
            out_ref[...] = pooled.astype(out_ref.dtype)
            return

        # ---- fold offsets into rows: (tm, O*H0p) -> (O*tm, H0p) -------------
        if use_scratch:
            for o in range(O):
                # 128-aligned column slice, sublane-aligned row-block store.
                act_ref[o * tm:(o + 1) * tm, :] = h0[:, o * h0_pad:(o + 1) * h0_pad]
            h = act_ref[...].astype(jnp.bfloat16)                     # (O*tm, H0p)
        else:  # O == 1
            h = h0.astype(jnp.bfloat16)

        # ---- layers 1..L-1: ONE matmul each with M = O*tm --------------------
        for l in range(1, num_layers):
            h = jnp.dot(h, wb[2 * l][...], preferred_element_type=jnp.float32)
            h = jnp.maximum(h + wb[2 * l + 1][...], 0.0)
            if l < num_layers - 1:
                h = h.astype(jnp.bfloat16)

        # ---- pool over offsets = sublane-aligned row blocks (VPU only) -------
        pooled = h[0:tm, :]
        for o in range(1, O):
            blk = h[o * tm:(o + 1) * tm, :]
            pooled = (pooled + blk) if pooling == "mean" else jnp.maximum(pooled, blk)
        if pooling == "mean":
            pooled = pooled * (1.0 / O)
        out_ref[...] = pooled.astype(out_ref.dtype)

    return kernel


def prepare_params(params, offsets=(-1, 0, 1), trailing=1):
    """One-time weight preprocessing (pad / roll / concat / bf16 cast).

    Call once at parameter init; the per-call forward path then only touches x.
    """
    offsets = tuple(offsets) if len(offsets) > 0 else (0,)
    O = len(offsets)
    num_layers = len(params)
    assert num_layers > 0

    widths = [int(w.shape[1]) for (w, _) in params]
    widths_pad = [_round_up(h, 128) for h in widths]
    Fin = int(params[0][0].shape[0])

    # Layer 0: roll weight rows per offset and concat along the output axis.
    #   dot(roll(x, off, axis=C), W0) == dot(x_flat, roll(W0, -off*trailing, 0))
    w0, b0 = params[0]
    H0, H0p = widths[0], widths_pad[0]
    w0p = jnp.pad(w0, ((0, 0), (0, H0p - H0)))
    w0cat = jnp.concatenate(
        [jnp.roll(w0p, -off * trailing, axis=0) for off in offsets], axis=1
    ).astype(jnp.bfloat16)                                            # (Fin, O*H0p)
    b0p = jnp.pad(b0, (0, H0p - H0)).astype(jnp.float32)
    b0cat = jnp.tile(b0p, (O,)).reshape(1, O * H0p)

    flat = [w0cat, b0cat]
    prev, prev_pad = H0, H0p
    for l in range(1, num_layers):
        w, b = params[l]
        wp = jnp.pad(w, ((0, prev_pad - prev),
                         (0, widths_pad[l] - widths[l]))).astype(jnp.bfloat16)
        bp = jnp.pad(b, (0, widths_pad[l] - widths[l]))
        bp = bp.astype(jnp.float32).reshape(1, widths_pad[l])
        flat += [wp, bp]
        prev, prev_pad = widths[l], widths_pad[l]

    meta = dict(offsets=offsets, num_offsets=O, num_layers=num_layers,
                in_features=Fin, trailing=trailing,
                widths=tuple(widths), widths_pad=tuple(widths_pad))
    return flat, meta


def rotation_invariant_mlp(x, prepared, pooling="mean", tile_rows=1024,
                           out_dtype=None):
    """Pallas forward pass matching RotationInvariantMLP.

    Args:
      x: (T, N, C, ...) input for a single band.
      prepared: output of prepare_params(params, offsets, trailing).
      pooling: "mean" or "max".
      tile_rows: target rows (T*N) per grid step (v6e: 1024-2048, v7x: 512-1024).
      out_dtype: output dtype (default x.dtype; bf16 halves HBM writeback).

    Returns:
      (T, N, mlp_features[-1]) array.
    """
    assert pooling in {"mean", "max"}
    flat_params, meta = prepared
    O = meta["num_offsets"]
    L = meta["num_layers"]
    Fin = meta["in_features"]
    widths, widths_pad = meta["widths"], meta["widths_pad"]
    H_last, H_last_pad = widths[-1], widths_pad[-1]
    H0p = widths_pad[0]

    T, N, C = x.shape[0], x.shape[1], x.shape[2]
    tr = int(np.prod(x.shape[3:])) if x.ndim > 3 else 1
    assert C * tr == Fin and tr == meta["trailing"], "input/params shape mismatch"
    M = T * N
    out_dtype = x.dtype if out_dtype is None else jnp.dtype(out_dtype)

    # ---- balanced row tiling -------------------------------------------------
    n_steps = max(1, math.ceil(M / tile_rows))
    if n_steps == 1 and M >= 16:
        n_steps = 2  # give v7x's second TensorCore work even for small M
    tm = _round_up(math.ceil(M / n_steps), 8)
    M_pad = tm * n_steps

    xf = x.reshape(M, Fin)
    if M_pad != M:
        xf = jnp.pad(xf, ((0, M_pad - M), (0, 0)))

    # ---- BlockSpecs (weights are grid-constant -> single buffer) -------------
    const = dict(pipeline_mode=pl.Buffered(1))
    in_specs = [
        pl.BlockSpec((tm, Fin), lambda i: (i, 0)),
        pl.BlockSpec((Fin, O * H0p), lambda i: (0, 0), **const),
        pl.BlockSpec((1, O * H0p), lambda i: (0, 0), **const),
    ]
    for l in range(1, L):
        in_specs.append(pl.BlockSpec((widths_pad[l - 1], widths_pad[l]),
                                     lambda i: (0, 0), **const))
        in_specs.append(pl.BlockSpec((1, widths_pad[l]), lambda i: (0, 0), **const))

    use_scratch = (L > 1) and (O > 1)
    scratch_shapes = ([pltpu.VMEM((O * tm, H0p), jnp.float32)]
                      if use_scratch else [])

    kernel = _make_kernel(L, O, pooling, tm, H0p, use_scratch)

    # ---- explicit VMEM budget (v5e default scoped limit is only 16 MiB) ------
    est = 2 * tm * Fin * x.dtype.itemsize                 # x tile, double-buffered
    est += 2 * tm * H_last_pad * out_dtype.itemsize       # out tile, double-buffered
    est += Fin * O * H0p * 2 + O * H0p * 4                # W0cat + b0cat (1 buffer)
    for l in range(1, L):
        est += widths_pad[l - 1] * widths_pad[l] * 2 + widths_pad[l] * 4
    est += tm * O * H0p * 4                               # layer-0 activations (f32)
    if use_scratch:
        est += O * tm * H0p * 4                           # staging scratch
    if L > 1:
        est += 2 * O * tm * max(widths_pad[1:]) * 4       # later-layer activations
    vmem_limit = int(min(max(2 * est, 32 << 20), 64 << 20))

    out = pl.pallas_call(
        kernel,
        out_shape=jax.ShapeDtypeStruct((M_pad, H_last_pad), out_dtype),
        grid_spec=pltpu.PrefetchScalarGridSpec(
            num_scalar_prefetch=0,
            grid=(n_steps,),                  # single, fully parallel row axis
            in_specs=in_specs,
            out_specs=pl.BlockSpec((tm, H_last_pad), lambda i: (i, 0)),
            scratch_shapes=scratch_shapes,
        ),
        compiler_params=pltpu.CompilerParams(
            dimension_semantics=("parallel",),
            vmem_limit_bytes=vmem_limit),
    )(xf, *flat_params)

    if M_pad != M or H_last_pad != H_last:
        out = out[:M, :H_last]
    return out.reshape(T, N, H_last)


def ref_forward(x, params, offsets=(-1, 0, 1), pooling="mean"):
    """Pure-JAX f32 reference mirroring the PyTorch module exactly."""
    offsets = tuple(offsets) if len(offsets) > 0 else (0,)
    rolled = jnp.stack([jnp.roll(x, off, axis=2) for off in offsets], axis=2)
    h = rolled.reshape(rolled.shape[0], rolled.shape[1], rolled.shape[2], -1)
    for (w, b) in params:
        h = jnp.maximum(jnp.dot(h, w) + b, 0.0)
    if pooling == "max":
        return jnp.max(h, axis=2)
    return jnp.mean(h, axis=2)


def init_params(key, in_features, mlp_features):
    """Deterministic synthetic Linear params (fan_in-scaled uniform, like torch)."""
    params = []
    fan_in = in_features
    for fan_out in mlp_features:
        key, kw, kb = jax.random.split(key, 3)
        bound = 1.0 / np.sqrt(fan_in)
        w = jax.random.uniform(kw, (fan_in, fan_out), jnp.float32, -bound, bound)
        b = jax.random.uniform(kb, (fan_out,), jnp.float32, -bound, bound)
        params.append((w, b))
        fan_in = fan_out
    return params


if __name__ == "__main__":
    # Small shapes consistent with the module: (T, N, C, W), in_features = C*W.
    T, N, C, W = 8, 2, 16, 2
    mlp_features = (32, 64)
    offsets = (-1, 0, 1)

    key = jax.random.PRNGKey(0)
    key, kx = jax.random.split(key)
    x = jax.random.normal(kx, (T, N, C, W), jnp.float32)
    params = init_params(key, C * W, mlp_features)

    # One-time weight preprocessing (pad / roll / concat / bf16), out of the
    # per-call forward path.
    prepared = prepare_params(params, offsets=offsets, trailing=W)

    for pooling in ("mean", "max"):
        out = jax.block_until_ready(
            rotation_invariant_mlp(x, prepared, pooling=pooling))
        ref = jax.block_until_ready(
            ref_forward(x, params, offsets=offsets, pooling=pooling))
        assert out.shape == (T, N, mlp_features[-1]), out.shape
        # bf16 MXU operands with f32 accumulation vs f32 reference.
        np.testing.assert_allclose(np.asarray(out), np.asarray(ref),
                                   rtol=2e-2, atol=2e-2)

    print("KERNEL_OK")
</pallas_src>

<mosaic_0001>
module attributes {stable_mosaic.version = 11 : i64} {
  func.func @kernel(%arg0: i32, %arg1: memref<8x32xf32, #tpu.memory_space<vmem>>, %arg2: memref<32x384xbf16, #tpu.memory_space<vmem>>, %arg3: memref<1x384xf32, #tpu.memory_space<vmem>>, %arg4: memref<128x128xbf16, #tpu.memory_space<vmem>>, %arg5: memref<1x128xf32, #tpu.memory_space<vmem>>, %arg6: memref<8x128xf32, #tpu.memory_space<vmem>>, %arg7: memref<24x128xf32, #tpu.memory_space<vmem>>) attributes {dimension_semantics = [#tpu.dimension_semantics<parallel>], iteration_bounds = array<i64: 2>, scalar_prefetch = 0 : i64, scratch_operands = 1 : i64, tpu.core_type = #tpu.core_type<tc>, window_params = [{transform_indices = @transform_0, window_bounds = array<i64: 8, 32>}, {pipeline_mode = #tpu.pipeline_mode<synchronous>, transform_indices = @transform_1, window_bounds = array<i64: 32, 384>}, {pipeline_mode = #tpu.pipeline_mode<synchronous>, transform_indices = @transform_2, window_bounds = array<i64: 1, 384>}, {pipeline_mode = #tpu.pipeline_mode<synchronous>, transform_indices = @transform_3, window_bounds = array<i64: 128, 128>}, {pipeline_mode = #tpu.pipeline_mode<synchronous>, transform_indices = @transform_4, window_bounds = array<i64: 1, 128>}, {transform_indices = @transform_5, window_bounds = array<i64: 8, 128>}]} {
    %c0 = arith.constant 0 : index
    %c0_0 = arith.constant 0 : index
    %0 = vector.load %arg1[%c0, %c0_0] : memref<8x32xf32, #tpu.memory_space<vmem>>, vector<8x32xf32>
    %1 = arith.truncf %0 : vector<8x32xf32> to vector<8x32xbf16>
    %c0_1 = arith.constant 0 : index
    %c0_2 = arith.constant 0 : index
    %2 = vector.load %arg2[%c0_1, %c0_2] : memref<32x384xbf16, #tpu.memory_space<vmem>>, vector<32x384xbf16>
    %cst = arith.constant dense<0.000000e+00> : vector<8x384xf32>
    %3 = tpu.matmul %1, %2, %cst {dimension_numbers = #tpu.dot_dimension_numbers<[1], [0], [0], [1], [0, 0, 1, 1], [], []>} : vector<8x32xbf16>, vector<32x384xbf16>, vector<8x384xf32> -> vector<8x384xf32>
    %c0_3 = arith.constant 0 : index
    %c0_4 = arith.constant 0 : index
    %4 = vector.load %arg3[%c0_3, %c0_4] : memref<1x384xf32, #tpu.memory_space<vmem>>, vector<1x384xf32>
    %5 = vector.broadcast %4 : vector<1x384xf32> to vector<8x384xf32>
    %6 = arith.addf %3, %5 : vector<8x384xf32>
    %cst_5 = arith.constant 0.000000e+00 : f32
    %7 = vector.broadcast %cst_5 : f32 to vector<8x384xf32>
    %8 = arith.maximumf %6, %7 : vector<8x384xf32>
    %9 = vector.extract_strided_slice %8 {offsets = [0, 0], sizes = [8, 128], strides = [1, 1]} : vector<8x384xf32> to vector<8x128xf32>
    %c0_6 = arith.constant 0 : index
    %c0_7 = arith.constant 0 : index
    %10 = vector.load %arg7[%c0_6, %c0_7] : memref<24x128xf32, #tpu.memory_space<vmem>>, vector<8x128xf32>
    tpu.vector_store %arg7[%c0_6, %c0_7], %9 {strides = array<i32>} : memref<24x128xf32, #tpu.memory_space<vmem>>, vector<8x128xf32>,
    %11 = vector.extract_strided_slice %8 {offsets = [0, 128], sizes = [8, 128], strides = [1, 1]} : vector<8x384xf32> to vector<8x128xf32>
    %c8 = arith.constant 8 : index
    %c0_8 = arith.constant 0 : index
    %12 = vector.load %arg7[%c8, %c0_8] : memref<24x128xf32, #tpu.memory_space<vmem>>, vector<8x128xf32>
    tpu.vector_store %arg7[%c8, %c0_8], %11 {strides = array<i32>} : memref<24x128xf32, #tpu.memory_space<vmem>>, vector<8x128xf32>,
    %13 = vector.extract_strided_slice %8 {offsets = [0, 256], sizes = [8, 128], strides = [1, 1]} : vector<8x384xf32> to vector<8x128xf32>
    %c16 = arith.constant 16 : index
    %c0_9 = arith.constant 0 : index
    %14 = vector.load %arg7[%c16, %c0_9] : memref<24x128xf32, #tpu.memory_space<vmem>>, vector<8x128xf32>
    tpu.vector_store %arg7[%c16, %c0_9], %13 {strides = array<i32>} : memref<24x128xf32, #tpu.memory_space<vmem>>, vector<8x128xf32>,
    %c0_10 = arith.constant 0 : index
    %c0_11 = arith.constant 0 : index
    %15 = vector.load %arg7[%c0_10, %c0_11] : memref<24x128xf32, #tpu.memory_space<vmem>>, vector<24x128xf32>
    %16 = arith.truncf %15 : vector<24x128xf32> to vector<24x128xbf16>
    %c0_12 = arith.constant 0 : index
    %c0_13 = arith.constant 0 : index
    %17 = vector.load %arg4[%c0_12, %c0_13] : memref<128x128xbf16, #tpu.memory_space<vmem>>, vector<128x128xbf16>
    %cst_14 = arith.constant dense<0.000000e+00> : vector<24x128xf32>
    %18 = tpu.matmul %16, %17, %cst_14 {dimension_numbers = #tpu.dot_dimension_numbers<[1], [0], [0], [1], [0, 0, 1, 1], [], []>} : vector<24x128xbf16>, vector<128x128xbf16>, vector<24x128xf32> -> vector<24x128xf32>
    %c0_15 = arith.constant 0 : index
    %c0_16 = arith.constant 0 : index
    %19 = vector.load %arg5[%c0_15, %c0_16] : memref<1x128xf32, #tpu.memory_space<vmem>>, vector<1x128xf32>
    %20 = vector.broadcast %19 : vector<1x128xf32> to vector<24x128xf32>
    %21 = arith.addf %18, %20 : vector<24x128xf32>
    %cst_17 = arith.constant 0.000000e+00 : f32
    %22 = vector.broadcast %cst_17 : f32 to vector<24x128xf32>
    %23 = arith.maximumf %21, %22 : vector<24x128xf32>
    %24 = vector.extract_strided_slice %23 {offsets = [0, 0], sizes = [8, 128], strides = [1, 1]} : vector<24x128xf32> to vector<8x128xf32>
    %25 = vector.extract_strided_slice %23 {offsets = [8, 0], sizes = [8, 128], strides = [1, 1]} : vector<24x128xf32> to vector<8x128xf32>
    %26 = arith.addf %24, %25 : vector<8x128xf32>
    %27 = vector.extract_strided_slice %23 {offsets = [16, 0], sizes = [8, 128], strides = [1, 1]} : vector<24x128xf32> to vector<8x128xf32>
    %28 = arith.addf %26, %27 : vector<8x128xf32>
    %cst_18 = arith.constant 0.333333343 : f32
    %29 = vector.broadcast %cst_18 : f32 to vector<8x128xf32>
    %30 = arith.mulf %28, %29 : vector<8x128xf32>
    %c0_19 = arith.constant 0 : index
    %c0_20 = arith.constant 0 : index
    %31 = vector.load %arg6[%c0_19, %c0_20] : memref<8x128xf32, #tpu.memory_space<vmem>>, vector<8x128xf32>
    tpu.vector_store %arg6[%c0_19, %c0_20], %30 {strides = array<i32>} : memref<8x128xf32, #tpu.memory_space<vmem>>, vector<8x128xf32>,
    return
  }
  func.func @transform_0(%arg0: i32) -> (i32, i32) {
    %c0_i32 = arith.constant 0 : i32
    %c0_i32_0 = arith.constant 0 : i32
    return %arg0, %c0_i32 : i32, i32
  }
  func.func @transform_1(%arg0: i32) -> (i32, i32) {
    %c0_i32 = arith.constant 0 : i32
    %c0_i32_0 = arith.constant 0 : i32
    %c0_i32_1 = arith.constant 0 : i32
    return %c0_i32, %c0_i32_0 : i32, i32
  }
  func.func @transform_2(%arg0: i32) -> (i32, i32) {
    %c0_i32 = arith.constant 0 : i32
    %c0_i32_0 = arith.constant 0 : i32
    %c0_i32_1 = arith.constant 0 : i32
    return %c0_i32, %c0_i32_0 : i32, i32
  }
  func.func @transform_3(%arg0: i32) -> (i32, i32) {
    %c0_i32 = arith.constant 0 : i32
    %c0_i32_0 = arith.constant 0 : i32
    %c0_i32_1 = arith.constant 0 : i32
    return %c0_i32, %c0_i32_0 : i32, i32
  }
  func.func @transform_4(%arg0: i32) -> (i32, i32) {
    %c0_i32 = arith.constant 0 : i32
    %c0_i32_0 = arith.constant 0 : i32
    %c0_i32_1 = arith.constant 0 : i32
    return %c0_i32, %c0_i32_0 : i32, i32
  }
  func.func @transform_5(%arg0: i32) -> (i32, i32) {
    %c0_i32 = arith.constant 0 : i32
    %c0_i32_0 = arith.constant 0 : i32
    return %arg0, %c0_i32 : i32, i32
  }
}

</mosaic_0001>

<bundles_post_ra>
// kernel: tpu_custom_call.1
= control target key start
LH: loop header
LB: loop body
LE: loop exit
PB: predicated region body
PF: predicated region fallthrough
CT: control target
= control target key end

     0   :  { %10 = vsyncpa [#allocation4], 0  ;;  %s1186_s0 = inlined_call_operand.hbm [shape: f32[16,32], index: 0, kind: input, shape index: {}]   ;;  %s1187_s1 = inlined_call_operand.hbm [shape: bf16[32,384], index: 1, kind: input, shape index: {}]   ;;  %s1188_s2 = inlined_call_operand.vmem [shape: f32[1,384], index: 2, kind: input, shape index: {}]   ;;  %s1189_s3 = inlined_call_operand.hbm [shape: bf16[128,128], index: 3, kind: input, shape index: {}]   ;;  %s1190_s4 = inlined_call_operand.vmem [shape: f32[1,128], index: 4, kind: input, shape index: {}]   ;;  %s1191_s5 = inlined_call_operand.hbm [shape: f32[16,128], index: 5, kind: output, shape index: {}]  }
   0x1   :  { %12 = vsyncpa [#allocation4 + $0x1], 0 }
   0x2   :  { %13 = vsyncpa [#allocation7], 0 }
   0x3   :  { %14 = vsyncpa [#allocation5], 0 }
   0x4   :  { %16 = vsyncpa [#allocation5 + $0x1], 0  ;;  %s1009_s18 = smov 0   ;;  %s1011_s19 = smov 0  }
   0x5   :  { %s1013_s20 = smov 0   ;;  %s1015_s21 = smov 0  }
   0x6 LB: > { %s1030_s22 = sadd.s32 4294967295, %s966_s21   ;;  %s654_s23 = sadd.s32 4294967294, %s966_s21   ;;  %s966_s21 = sphi %s1015_s21, %s1213_s21   ;;  %s962_s20 = sphi %s1013_s20, %s1212_s20   ;;  %s958_s19 = sphi %s1011_s19, %s1211_s19   ;;  %s954_s18 = sphi %s1009_s18, %s1210_s18  }
   0x7   : > { %p42_p0 = scmp.ne.s32.totalorder %s958_s19, %s954_s18  ;;  %p1192_p1 = scmp.eq.s32.totalorder %s1030_s22, 0 }
   0x8   : > { %p156_p3 = scmp.eq.s32.totalorder %s654_s23, 1  ;;  %p655_p5 = scmp.ge.s32.totalorder %s966_s21, 1 }
   0x9   : > { %p1039_p4 = por %p1192_p1, %p42_p0  ;;  %p163_p7 = scmp.lt.s32.totalorder %s966_s21, 3 }
   0xa   : > { %p1044_p6 = por %p156_p3, %p42_p0  ;;  %s968_s27 = smov [#allocation6]  }
   0xb   : > { %s1196_s24 = scalar_select %p1039_p4, 1, 0 }
   0xc   : > { %s1197_s25 = scalar_select %p1044_p6, 1, 0 }
   0xd   : > { %p1049_p8 = pnand %p655_p5, %p163_p7  ;;  %s175_s28 = sshll.u32 %s968_s27, 4  ;;  %s176_s28 = int_to_ptr.vmem [resolvable:$true] %s175_s28 }
   0xe   : > { %s969_s30 = smov [#allocation8]   ;;  %s829_s7 = scalar_lea.vmem %s176_s28, 768 }
   0xf   : > { %s1198_s26 = scalar_select %p1049_p8, 1, 0 }
  0x10   : > { %p740_p9 = pneg %p1049_p8  ;;  %s191_s6 = sshll.u32 %s969_s30, 4  ;;  %s192_s6 = int_to_ptr.vmem [resolvable:$true] %s191_s6 }
  0x11   : > { %p830_p13 = scmp.ne.s32.totalorder %s176_s28, %s829_s7  ;;  %p837_p5 = scmp.lt.s32.totalorder %s176_s28, %s176_s28 }
  0x12   : > { %p1058_p11 = pnand %p740_p9, %p1192_p1  ;;  %p838_p7 = scmp.lt.s32.totalorder %s829_s7, %s829_s7 }
  0x14   : > { %p820_p12 = pneg %p1058_p11  ;;  %p839_p10 = por %p838_p7, %p837_p5 }
  0x16   : > { %p832_p0 = pnand %p830_p13, %p820_p12 }
  0x18   : > { %p833_p3 = pneg %p832_p0 }
  0x1a   : > { %p840_p9 = pnand %p839_p10, %p833_p3 }
  0x1c   : > { %843 = shalt.err (!%p840_p9)
}
  0x1d   : > { %s970_s8 = smov 192   ;;  %s971_s9 = smov 12  }
  0x1e   : > { %743 = dma.hbm_to_vmem [thread:$0]  (!%p1058_p11), %s1187_s1, 768, %s176_s28, [#allocation7], %s970_s8, %s970_s8, %s971_s9  }
  0x1f   : > { %s855_s12 = scalar_lea.vmem %s192_s6, 1024  ;;  %p863_p2 = scmp.lt.s32.totalorder %s192_s6, %s192_s6 }
  0x20   : > { %p856_p1 = scmp.ne.s32.totalorder %s192_s6, %s855_s12  ;;  %p864_p6 = scmp.lt.s32.totalorder %s855_s12, %s855_s12 }
  0x22   : > { %p858_p13 = pnand %p856_p1, %p820_p12  ;;  %p865_p5 = por %p864_p6, %p863_p2 }
  0x24   : > { %p859_p0 = pneg %p858_p13 }
  0x26   : > { %p866_p10 = pnand %p865_p5, %p859_p0 }
  0x28   : > { %869 = shalt.err (!%p866_p10)
}
  0x29   : > { %s972_s13 = smov 64   ;;  %s973_s14 = smov 4  }
  0x2a   : > { %746 = dma.hbm_to_vmem [thread:$0]  (!%p1058_p11), %s1189_s3, 1024, %s192_s6, [#allocation7], %s972_s13, %s972_s13, %s973_s14  }
  0x2b   : > { %s1081_s17 = sadd.s32 1, %s966_s21   ;;  %s29_s27 = sadd.s32 1, %s962_s20 }
  0x2c   : > { %s26_s23 = ssub.s32 %s966_s21, %s1081_s17  ;;  %p36_p2 = scmp.ne.s32.totalorder %s962_s20, %s958_s19 }
  0x2d   : > { %p27_p1 = scmp.eq.s32.totalorder %s26_s23, 0  ;;  %p37_p6 = scmp.eq.s32.totalorder %s966_s21, 0 }
  0x2e   : > { %p1200_p3 = scmp.eq.s32.totalorder %s1030_s22, 1  ;;  %p757_p9 = scmp.lt.s32.totalorder %s966_s21, 2 }
  0x2f   : > { %s1090_s28 = scalar_select %p27_p1, %s962_s20, %s29_s27  }
  0x30   : > { %p38_p12 = por %p37_p6, %p36_p2  ;;  %p1094_p7 = por %p1200_p3, %p36_p2 }
  0x31   : > { %s208_s29 = sand.u32 1, %s962_s20   ;;  %s660_s6 = sshll.u32 %s966_s21, 7 }
  0x32   : > { %s1201_s30 = scalar_select %p1094_p7, 1, 0 }
  0x33   : > { %s659_s7 = sshll.u32 %s208_s29, 3  ;;  %s1104_s10 = scalar_lea.hbm %s1186_s0, %s660_s6 }
  0x34   : > { %s212_s11 = scalar_lea.vmem [#allocation3], %s659_s7  ;;  %p1106_p11 = pnand %p757_p9, %p38_p12 }
  0x35   : > { %s219_s12 = sshll.u32 %s212_s11, 4  ;;  %s209_s14 = scalar_lea.sflag [#allocation4], %s208_s29  ;;  %s220_s12 = int_to_ptr.vmem [resolvable:$true] %s219_s12 }
  0x36   : > { %s870_s15 = scalar_lea.hbm %s1104_s10, 128  ;;  %p872_p0 = pneg %p1106_p11 }
  0x37   : > { %p871_p13 = scmp.ne.s32.totalorder %s1104_s10, %s870_s15  ;;  %s875_s27 = scalar_lea.hbm %s1186_s0, 256 }
  0x38   : > { %p876_p1 = scmp.lt.s32.totalorder %s1104_s10, %s1186_s0  ;;  %p877_p2 = scmp.lt.s32.totalorder %s875_s27, %s870_s15 }
  0x39   : > { %p873_p5 = pnand %p872_p0, %p871_p13 }
  0x3a   : > { %p878_p6 = por %p877_p2, %p876_p1 }
  0x3b   : > { %p874_p10 = pneg %p873_p5 }
  0x3d   : > { %p879_p12 = pnand %p878_p6, %p874_p10 }
  0x3f   : > { %882 = shalt.err (!%p879_p12)
}
  0x40   : > { %s883_s8 = scalar_lea.vmem %s220_s12, 128  ;;  %s974_s29 = smov [#allocation3]  }
  0x41   : > { %p884_p3 = scmp.ne.s32.totalorder %s220_s12, %s883_s8  ;;  %s888_s9 = sshll.u32 %s974_s29, 4  ;;  %s889_s9 = int_to_ptr.vmem [resolvable:$false] %s888_s9 }
  0x42   : > { %s890_s11 = scalar_lea.vmem %s889_s9, 256  ;;  %p891_p13 = scmp.lt.s32.totalorder %s220_s12, %s889_s9 }
  0x43   : > { %p886_p9 = pnand %p884_p3, %p872_p0  ;;  %p892_p5 = scmp.lt.s32.totalorder %s890_s11, %s883_s8 }
  0x45   : > { %p887_p7 = pneg %p886_p9  ;;  %p893_p4 = por %p892_p5, %p891_p13 }
  0x47   : > { %p894_p8 = pnand %p893_p4, %p887_p7 }
  0x49   : > { %897 = shalt.err (!%p894_p8)
}
  0x4a   : > { %750 = dma.hbm_to_vmem [thread:$0]  (!%p1106_p11), %s1104_s10, 128, %s220_s12, %s209_s14  }
  0x4b   : > { %p1203_p10 = scmp.ne.s32.totalorder %s1198_s26, 0 }
  0x4c   : > { %s1127_s15 = sand.u32 (!%p1203_p10), 1, %s958_s19   ;;  %p1204_p4 = scmp.ne.s32.totalorder (!%p1203_p10), %s1196_s24, 0 }
  0x4d   : > { %228 = sbr.rel (%p1203_p10) target bundleno = 524 (0x20c), region = 40  ;;  %s662_s16 = sshll.u32 (!%p1203_p10), %s1127_s15, 3 }
  0x4e   : > { %s231_s23 = scalar_lea.sflag (!%p1203_p10), [#allocation4], %s1127_s15  ;;  %s234_s27 = scalar_lea.vmem (!%p1203_p10), [#allocation3], %s662_s16 }
  0x52   : > { %941 = dma.done.wait (%p1204_p4), %s231_s23, 128  }
  0x53   : > { %943 = vsyncadd (%p1204_p4), %s231_s23, 4294967168  ;;  %p1205_p8 = scmp.eq.s32.totalorder %s1030_s22, 0 }
  0x55   : > { %945 = dma.done.wait (%p1205_p8), [#allocation7], 1792   ;;  %p1206_p7 = pmov %p1205_p8 }
  0x56   : > { %v975_v0 = vmov 0   ;;  %v802_v1 = vld [vmem:[#allocation6 + $0x1c] ss:$12 sps:$4 sm:$0xff]   ;;  %v804_v2 = vld [vmem:[#allocation6 + $0x18] ss:$12 sps:$4 sm:$0xff]   ;;  %vm329_vm0 = vcmask 261120   ;;  %v282_v18 = vlaneseq }
  0x57   : > { %947 = vsyncadd (%p1206_p7), [#allocation7], 4294965504  ;;  %365 = vmatprep.mubr.bf16.mxu1 %v975_v0  ;;  %345 = vmatprep.subr.bf16.mxu1 %v802_v1  ;;  %v805_v3 = vld [vmem:[#allocation6 + $0x4] ss:$12 sps:$4 sm:$0xff]   ;;  %v807_v4 = vld [vmem:[#allocation6] ss:$12 sps:$4 sm:$0xff]  }
  0x58   : > { %346 = vmatpush1.bf16.msra.mxu1 %v804_v2  ;;  %v270_v5 = vld [vmem:[%s234_s27] sm:$0xff]  ;;  %v810_v6 = vld [vmem:[#allocation8 + $0x38] sm:$0xff]   ;;  %v811_v8 = vld [vmem:[#allocation8 + $0x30] sm:$0xff]   ;;  %v976_v10 = vmov 0.0   ;;  %vm977_vm1 = vmmov 0   ;;  %v283_v19 = vshrl.u32 %v282_v18, 7 }
  0x59   : > { %347 = vmatprep.subr.bf16.mxu1 %v805_v3  ;;  %v271_v7 = vpack.c.bf16 %v270_v5, %v270_v5  ;;  %v808_v9 = vld [vmem:[#allocation6 + $0x20] ss:$12 sps:$4 sm:$0xff]   ;;  %708 = vmatprep.subr.bf16.mxu0 %v810_v6  ;;  %v812_v11 = vld [vmem:[#allocation8 + $0x28] sm:$0xff]   ;;  %v809_v12 = vld [vmem:[#allocation6 + $0x8] ss:$12 sps:$4 sm:$0xff]   ;;  %s684_s13 = sshll.u32 %s1030_s22, 7 }
  0x5a   : > { %709 = vmatpush3.bf16.msra.mxu0 %v810_v6  ;;  %v813_v13 = vld [vmem:[#allocation8 + $0x20] sm:$0xff]   ;;  %v814_v14 = vld [vmem:[#allocation8 + $0x18] sm:$0xff]   ;;  %v815_v15 = vld [vmem:[#allocation8 + $0x10] sm:$0xff]   ;;  %v284_v20 = vsub.s32 0, %v283_v19  ;;  %v288_v22 = vsub.s32 1, %v283_v19  ;;  %v292_v27 = vsub.s32 2, %v283_v19  ;;  %s563_s29 = scalar_lea.hbm %s1191_s5, %s684_s13 }
  0x5b   : > { %710 = vmatprep.subr.bf16.mxu0 %v811_v8  ;;  %v816_v16 = vld [vmem:[#allocation8 + $0x8] sm:$0xff]   ;;  %v817_v17 = vld [vmem:[#allocation8] sm:$0xff]   ;;  %s268_s14 = scalar_lea.vmem [#allocation9], %s662_s16  ;;  %s552_s9 = scalar_lea.sflag [#allocation5], %s1127_s15 }
  0x5c   : > { %348 = vmatpush1.bf16.msra.mxu1 %v807_v4  ;;  %v280_v21 = vld [vmem:[%s1188_s2] sm:$0x7]  ;;  %s565_s6 = sshll.u32 %s268_s14, 4  ;;  %p1207_p0 = scmp.ne.s32.totalorder %s1201_s30, 0  ;;  %s566_s6 = int_to_ptr.vmem [resolvable:$true] %s565_s6 }
  0x5d   : > { %700 = vmatprep.subr.bf16.mxu1 %v976_v10  ;;  %v285_v23 = vrot.slane %v280_v21, %v284_v20  ;;  %v289_v24 = vrot.slane %v280_v21, %v288_v22  ;;  %v293_v33 = vrot.slane %v280_v21, %v292_v27  ;;  %v674_v45 = vld [vmem:[%s1190_s4] ss:$0 sm:$0xff]  ;;  %s898_s11 = scalar_lea.vmem %s566_s6, 128  ;;  %s978_s23 = smov [#allocation9]  }
  0x5e   : > { %711 = vmatpush3.bf16.msra.mxu0 %v811_v8  ;;  %p899_p11 = scmp.ne.s32.totalorder %s566_s6, %s898_s11  ;;  %s902_s27 = sshll.u32 %s978_s23, 4  ;;  %s903_s27 = int_to_ptr.vmem [resolvable:$false] %s902_s27 }
  0x5f   : > { %672 = vmatmul.mubr.msk.bf16.vlgmr.msra.gmra.mxu1 %vm329_vm0, %v271_v7  ;;  %712 = vmatprep.subr.bf16.mxu0 %v812_v11  ;;  %s904_s22 = scalar_lea.vmem %s903_s27, 256  ;;  %p905_p6 = scmp.lt.s32.totalorder %s566_s6, %s903_s27 }
  0x60   : > { %701 = vmatpush3.bf16.msra.mxu1 %v808_v9  ;;  %704 = vmatprep.mubr.msk.bf16.mxu1 %vm977_vm1, %v976_v10  ;;  %p900_p1 = pnand %p899_p11, %p1207_p0  ;;  %p906_p12 = scmp.lt.s32.totalorder %s904_s22, %s898_s11 }
  0x61   : > { %702 = vmatprep.subr.bf16.mxu1 %v976_v10 }
  0x62   : > { %713 = vmatpush3.bf16.msra.mxu0 %v812_v11  ;;  %p901_p2 = pneg %p900_p1  ;;  %p907_p3 = por %p906_p12, %p905_p6 }
  0x63   : > { %714 = vmatprep.subr.bf16.mxu0 %v813_v13 }
  0x64   : > { %703 = vmatpush3.bf16.msra.mxu1 %v809_v12  ;;  %p908_p9 = pnand %p907_p3, %p901_p2 }
  0x66   : > { %715 = vmatpush3.bf16.msra.mxu0 %v813_v13 }
  0x67   : > { %705 = vmatmul.mubr.msk.bf16.vlgmr.msra.gmra.mxu1 %vm329_vm0, %v271_v7  ;;  %716 = vmatprep.subr.bf16.mxu0 %v814_v14 }
  0x6a   : > { %717 = vmatpush3.bf16.msra.mxu0 %v814_v14 }
  0x6b   : > { %718 = vmatprep.subr.bf16.mxu0 %v815_v15 }
  0x6e   : > { %719 = vmatpush3.bf16.msra.mxu0 %v815_v15 }
  0x6f   : > { %720 = vmatprep.subr.bf16.mxu0 %v816_v16 }
  0x72   : > { %721 = vmatpush3.bf16.msra.mxu0 %v816_v16 }
  0x73   : > { %722 = vmatprep.subr.bf16.mxu0 %v817_v17 }
  0x76   : > { %723 = vmatpush3.bf16.msra.mxu0 %v817_v17 }
 0x11f   : > { %v367_v25 = vpop.f32.mrf.mxu1 }
 0x120   : > { %v368_v26 = vadd.f32 %v367_v25, %v285_v23 }
 0x121   : > { %v369_v28 = vpop.f32.mrf.mxu1 }
 0x122   : > { %v370_v29 = vadd.f32 %v369_v28, %v289_v24  ;;  %v414_v31 = vmax.f32 %v368_v26, 0.0 }
 0x123   : > { %v371_v30 = vpop.f32.mrf.mxu1 }
 0x124   : > { %v415_v32 = vmax.f32 %v370_v29, 0.0 }
 0x125   : > { %v372_v34 = vpop.f32.mrf.mxu1 }
 0x126   : > { %v423_v35 = vpack.c.bf16 %v415_v32, %v414_v31 }
 0x127   : > { %v408_v36 = vpop.f32.mrf.mxu1 }
 0x128   : > { %v409_v37 = vadd.f32 %v408_v36, %v293_v33  ;;  %724 = vmatprep.mubr.bf16.mxu0 %v423_v35 }
 0x129   : > { %v706_v38 = vpop.f32.mrf.mxu1 }
 0x12a   : > { %v416_v39 = vmax.f32 %v409_v37, 0.0 }
 0x12b   : > { %v411_v40 = vpop.f32.mrf.mxu1 }
 0x12c   : > { %v424_v41 = vpack.c.bf16 %v416_v39, %v416_v39 }
 0x12d   : > { %v707_v42 = vpop.f32.mrf.mxu1 }
 0x12e   : > { %725 = vmatmul.mubr.bf16.vlgmr.msra.gmra.mxu0 %v424_v41 }
 0x1ee   : > { %v726_v43 = vpop.f32.mrf.mxu0 }
 0x1ef   : > { %v539_v49 = vadd.f32 %v726_v43, %v674_v45 }
 0x1f0   : > { %v530_v44 = vpop.f32.mrf.mxu0 }
 0x1f1   : > { %v531_v47 = vadd.f32 %v674_v45, %v530_v44  ;;  %v546_v53 = vmax.f32 %v539_v49, 0.0 }
 0x1f2   : > { %v727_v46 = vpop.f32.mrf.mxu0 }
 0x1f3   : > { %v544_v51 = vmax.f32 %v531_v47, 0.0 }
 0x1f4   : > { %v533_v48 = vpop.f32.mrf.mxu0 }
 0x1f5   : > { %v534_v50 = vadd.f32 %v674_v45, %v533_v48 }
 0x1f7   : > { %v545_v52 = vmax.f32 %v534_v50, 0.0 }
 0x1f9   : > { %v547_v54 = vadd.f32 %v545_v52, %v544_v51 }
 0x1fb   : > { %v548_v55 = vadd.f32 %v547_v54, %v546_v53 }
 0x1fd   : > { %v549_v56 = vmul.f32 0.33333334, %v548_v55 }
 0x1ff   : > { %550 = vst [vmem:[%s268_s14] sm:$0xff] %v549_v56 }
 0x200   : > { %911 = shalt.err (!%p908_p9)
}
 0x201   : > { %s912_s16 = scalar_lea.hbm %s563_s29, 128  ;;  %s916_s26 = scalar_lea.hbm %s1191_s5, 256 }
 0x202   : > { %p913_p13 = scmp.ne.s32.totalorder %s563_s29, %s912_s16  ;;  %p917_p4 = scmp.lt.s32.totalorder %s563_s29, %s1191_s5 }
 0x203   : > { %p918_p8 = scmp.lt.s32.totalorder %s916_s26, %s912_s16 }
 0x204   : > { %p914_p5 = pnand %p913_p13, %p1207_p0 }
 0x205   : > { %p919_p7 = por %p918_p8, %p917_p4 }
 0x206   : > { %p915_p10 = pneg %p914_p5 }
 0x208   : > { %p920_p11 = pnand %p919_p7, %p915_p10 }
 0x20a   : > { %923 = shalt.err (!%p920_p11)
}
 0x20b   : > { %738 = dma.vmem_to_hbm [thread:$0]  (%p1207_p0), %s566_s6, 128, %s563_s29, %s552_s9  }
 0x20c PF: > { %s577_s13 = sand.u32 1, %s954_s18   ;;  %p1208_p1 = scmp.ne.s32.totalorder %s1197_s25, 0 }
 0x20d   : > { %p1209_p2 = scmp.ge.s32.totalorder %s966_s21, 2  ;;  %s578_s14 = scalar_lea.sflag [#allocation5], %s577_s13 }
 0x20f   : > { %p752_p6 = pnand %p1209_p2, %p1208_p1 }
 0x211   : > { %p753_p12 = pneg %p752_p6 }
 0x213   : > { %949 = dma.done.wait (%p753_p12), %s578_s14, 128  }
 0x214   : > { %951 = vsyncadd (%p753_p12), %s578_s14, 4294967168  ;;  %p19_p3 = scmp.ge.s32.totalorder %s1081_s17, 4   ;;  %s1210_s18 = smov %s958_s19 }
 0x215   : > { %s1211_s19 = smov %s962_s20  ;;  %s1212_s20 = smov %s1090_s28 }
 0x216   : > { %s1213_s21 = smov %s1081_s17  ;;  %21 = sbr.rel (!%p19_p3) target bundleno = 6 (0x6), region = 93 }
 0x21b   :  { %583 = vsyncpa [#allocation4], 1 }
 0x21c   :  { %585 = vsyncpa [#allocation4 + $0x1], 1 }
 0x21d   :  { %586 = vsyncpa [#allocation7], 1 }
 0x21e   :  { %587 = vsyncpa [#allocation5], 1 }
 0x21f   :  { %589 = vsyncpa [#allocation5 + $0x1], 1 }

</bundles_post_ra>
